<compile_context>
chip_gen: v6e
topology: v6e:2x2x1
jax: 0.10.0
libtpu: 0.0.40
codegen_flags: <defaults>
</compile_context>

<pallas_src>
import jax
import jax.numpy as jnp
from jax.experimental import pallas as pl
from jax.experimental.pallas import tpu as pltpu


def _drop_path_kernel(scale_ref, x_ref, o_ref):
    # scale_ref: VMEM f32[TILE_B, 1]   (per-sample scale, already / keep_prob)
    # x_ref:     VMEM x[TILE_B, TILE_N]
    # o_ref:     VMEM out[TILE_B, TILE_N]
    # Multiply in f32 (no-op cast for f32 inputs; avoids bf16-VPU issues on
    # v5e), broadcast over the lane dim, cast back to the output dtype.
    o_ref[...] = (x_ref[...].astype(jnp.float32) * scale_ref[...]).astype(o_ref.dtype)


def _choose_tiles(B: int, N: int, itemsize: int):
    """Pick (TILE_B, TILE_N) that are either full-dim or (8,128)-aligned."""
    sub = max(8, 32 // max(itemsize, 1))    # sublane packing: 8 f32 / 16 bf16 / 32 i8
    MAX_TILE_N = 16384                      # lane-dense, fat chunks (128-multiple)
    TILE_BYTES = 4 * 1024 * 1024            # per-tile budget; 4 bufs stay << 32 MiB

    # Lane axis: take the whole row if it fits (full-dim blocks are always
    # legal regardless of 128-divisibility); otherwise a 128-multiple chunk.
    TILE_N = N if N <= MAX_TILE_N else MAX_TILE_N

    # Sublane axis: as many rows as the byte budget allows (multiple of `sub`),
    # or the whole batch if it is smaller (full-dim block, always legal).
    max_tb = max(sub, (TILE_BYTES // max(TILE_N * itemsize, 1)) // sub * sub)
    TILE_B = B if B <= max_tb else max_tb
    return TILE_B, TILE_N


def drop_path_pallas(x, drop_prob: float = 0.0, training: bool = False,
                     scale_by_keep: bool = True, *, key=None):
    """Pallas implementation of timm-style DropPath forward."""
    if drop_prob == 0.0 or not training:
        return x
    if key is None:
        # PyTorch draws fresh randomness every call; a silent fixed default
        # key would repeat the same drop pattern forever.
        raise ValueError("drop_path_pallas requires an explicit PRNG `key` "
                         "when training with drop_prob > 0")

    keep_prob = 1.0 - drop_prob
    B = x.shape[0]
    orig_shape = x.shape

    # Per-sample Bernoulli(keep_prob) scale (B scalars of plain-JAX glue).
    rand = jax.random.bernoulli(key, p=keep_prob, shape=(B,)).astype(jnp.float32)
    if keep_prob > 0.0 and scale_by_keep:
        rand = rand / jnp.float32(keep_prob)
    scale_col = rand.reshape(B, 1)

    # Flatten per-sample dims -> (B, N) lane-dense slab (layout-free reshape).
    x2d = x.reshape(B, -1)
    N = x2d.shape[1]

    itemsize = jnp.dtype(x.dtype).itemsize
    TILE_B, TILE_N = _choose_tiles(B, N, itemsize)
    grid = (pl.cdiv(B, TILE_B), pl.cdiv(N, TILE_N))

    out2d = pl.pallas_call(
        _drop_path_kernel,
        out_shape=jax.ShapeDtypeStruct((B, N), x.dtype),
        grid_spec=pltpu.PrefetchScalarGridSpec(
            num_scalar_prefetch=0,
            grid=grid,
            in_specs=[
                pl.BlockSpec((TILE_B, 1), lambda i, j: (i, 0)),       # f32 scale column
                pl.BlockSpec((TILE_B, TILE_N), lambda i, j: (i, j)),  # data tile
            ],
            out_specs=pl.BlockSpec((TILE_B, TILE_N), lambda i, j: (i, j)),
        ),
        compiler_params=pltpu.CompilerParams(
            dimension_semantics=("parallel", "parallel"),
            vmem_limit_bytes=32 * 1024 * 1024,
        ),
    )(scale_col, x2d)

    return out2d.reshape(orig_shape)


class DropPath:
    """Mirror of the PyTorch DropPath module (forward only)."""

    def __init__(self, drop_prob: float = 0.0, scale_by_keep: bool = True):
        self.drop_prob = drop_prob
        self.scale_by_keep = scale_by_keep
        self.training = True  # PyTorch modules default to training mode

    def __call__(self, x, *, key=None):
        return drop_path_pallas(x, self.drop_prob, self.training,
                                self.scale_by_keep, key=key)


if __name__ == "__main__":
    key = jax.random.PRNGKey(0)
    k_x, k_mask, k_x2, k_mask2 = jax.random.split(key, 4)

    # Small NCHW input consistent with the module's usage.
    x = jax.random.normal(k_x, (2, 4, 16, 16), dtype=jnp.float32)

    # Training path with non-zero drop probability (exercises the kernel).
    module = DropPath(drop_prob=0.2, scale_by_keep=True)
    module.training = True
    out_train = jax.block_until_ready(module(x, key=k_mask))

    # Sanity: each sample must be either 0 * x_b or x_b / keep_prob.
    keep_prob = 1.0 - 0.2
    rand = jax.random.bernoulli(k_mask, p=keep_prob, shape=(2,)).astype(jnp.float32)
    expected = x * (rand / keep_prob)[:, None, None, None]
    assert jnp.allclose(out_train, expected, atol=1e-6), "train-path mismatch"
    assert out_train.shape == x.shape and out_train.dtype == x.dtype

    # Second, non-128-aligned shape + scale_by_keep=False (still full-dim blocks).
    x2 = jax.random.normal(k_x2, (3, 5, 7, 9), dtype=jnp.float32)
    module2 = DropPath(drop_prob=0.5, scale_by_keep=False)
    out2 = jax.block_until_ready(module2(x2, key=k_mask2))
    rand2 = jax.random.bernoulli(k_mask2, p=0.5, shape=(3,)).astype(jnp.float32)
    expected2 = x2 * rand2[:, None, None, None]
    assert jnp.allclose(out2, expected2, atol=1e-6), "odd-shape mismatch"

    # Eval path must be identity.
    module.training = False
    out_eval = jax.block_until_ready(module(x))
    assert jnp.allclose(out_eval, x), "eval-path must be identity"

    print("KERNEL_OK")
</pallas_src>

<mosaic_0001>
module attributes {stable_mosaic.version = 11 : i64} {
  func.func @_drop_path_kernel(%arg0: i32, %arg1: i32, %arg2: memref<2x1xf32, #tpu.memory_space<vmem>>, %arg3: memref<2x1024xf32, #tpu.memory_space<vmem>>, %arg4: memref<2x1024xf32, #tpu.memory_space<vmem>>) attributes {dimension_semantics = [#tpu.dimension_semantics<parallel>, #tpu.dimension_semantics<parallel>], iteration_bounds = array<i64: 1, 1>, scalar_prefetch = 0 : i64, scratch_operands = 0 : i64, tpu.core_type = #tpu.core_type<tc>, window_params = [{transform_indices = @transform_0, window_bounds = array<i64: 2, 1>}, {transform_indices = @transform_1, window_bounds = array<i64: 2, 1024>}, {transform_indices = @transform_2, window_bounds = array<i64: 2, 1024>}]} {
    %c0 = arith.constant 0 : index
    %c0_0 = arith.constant 0 : index
    %0 = vector.load %arg3[%c0, %c0_0] : memref<2x1024xf32, #tpu.memory_space<vmem>>, vector<2x1024xf32>
    %c0_1 = arith.constant 0 : index
    %c0_2 = arith.constant 0 : index
    %1 = vector.load %arg2[%c0_1, %c0_2] : memref<2x1xf32, #tpu.memory_space<vmem>>, vector<2x1xf32>
    %2 = vector.broadcast %1 : vector<2x1xf32> to vector<2x1024xf32>
    %3 = arith.mulf %0, %2 : vector<2x1024xf32>
    %c0_3 = arith.constant 0 : index
    %c0_4 = arith.constant 0 : index
    %4 = vector.load %arg4[%c0_3, %c0_4] : memref<2x1024xf32, #tpu.memory_space<vmem>>, vector<2x1024xf32>
    tpu.vector_store %arg4[%c0_3, %c0_4], %3 {strides = array<i32>} : memref<2x1024xf32, #tpu.memory_space<vmem>>, vector<2x1024xf32>,
    return
  }
  func.func @transform_0(%arg0: i32, %arg1: i32) -> (i32, i32) {
    %c0_i32 = arith.constant 0 : i32
    %c0_i32_0 = arith.constant 0 : i32
    return %arg0, %c0_i32 : i32, i32
  }
  func.func @transform_1(%arg0: i32, %arg1: i32) -> (i32, i32) {
    %c0_i32 = arith.constant 0 : i32
    return %arg0, %arg1 : i32, i32
  }
  func.func @transform_2(%arg0: i32, %arg1: i32) -> (i32, i32) {
    %c0_i32 = arith.constant 0 : i32
    return %arg0, %arg1 : i32, i32
  }
}

</mosaic_0001>

<bundles_post_ra>
// kernel: tpu_custom_call.1
= control target key start
LH: loop header
LB: loop body
LE: loop exit
PB: predicated region body
PF: predicated region fallthrough
CT: control target
= control target key end

     0   :  { %7 = vsyncpa [#allocation3], 0  ;;  %s135_s0 = inlined_call_operand.vmem [shape: f32[2,1], index: 0, kind: input, shape index: {}]   ;;  %s136_s1 = inlined_call_operand.hbm [shape: f32[2,1024], index: 1, kind: input, shape index: {}]   ;;  %s137_s2 = inlined_call_operand.hbm [shape: f32[2,1024], index: 2, kind: output, shape index: {}]  }
   0x1   :  { %8 = vsyncpa [#allocation4], 0  ;;  %s107_s9 = smov [#allocation2]  }
   0x2   :  { %s17_s10 = sshll.u32 %s107_s9, 4  ;;  %s18_s10 = int_to_ptr.vmem [resolvable:$true] %s17_s10 }
   0x3   :  { %s71_s11 = scalar_lea.vmem %s18_s10, 256  ;;  %p76_p1 = scmp.lt.s32.totalorder %s18_s10, %s18_s10 }
   0x4   :  { %p72_p0 = scmp.ne.s32.totalorder %s18_s10, %s71_s11  ;;  %p77_p2 = scmp.lt.s32.totalorder %s71_s11, %s71_s11 }
   0x6   :  { %p78_p3 = por %p77_p2, %p76_p1 }
   0x8   :  { %p79_p4 = pnand %p78_p3, %p72_p0 }
   0xa   :  { %82 = shalt.err (!%p79_p4)
}
   0xb   :  { %20 = dma.hbm_to_vmem [thread:$0]  %s136_s1, 256, %s18_s10, [#allocation3]  }
   0xc   :  { %103 = dma.done.wait [#allocation3], 256  }
   0xd   :  { %104 = vsyncadd [#allocation3], 4294967040  ;;  %v108_v0 = vmov 0   ;;  %v26_v1 = vld [vmem:[%s135_s0] sm:$0x3]  ;;  %v34_v4 = vlaneseq  ;;  %v25_v10 = vld [vmem:[#allocation2 + $0x8] sm:$0xff] }
   0xe   :  { %62 = vset.pattern.permute.xlu0 %v108_v0  ;;  %v109_v2 = vmov 269488144   ;;  %v24_v9 = vld [vmem:[#allocation2] sm:$0xff]  ;;  %s110_s16 = smov [#allocation5]  }
   0xf   :  { %29 = vperm.xlu0 %62, %v26_v1   ;;  %v32_v3 = vunpack.c.l.s4 %v109_v2  ;;  %v35_v6 = vshrl.u32 %v34_v4, 7  ;;  %s49_s1 = sshll.u32 %s110_s16, 4  ;;  %s50_s1 = int_to_ptr.vmem [resolvable:$true] %s49_s1 }
  0x10   :  { %s83_s17 = scalar_lea.vmem %s50_s1, 256  ;;  %p88_p6 = scmp.lt.s32.totalorder %s50_s1, %s50_s1 }
  0x11   :  { %v33_v5 = vunpack.c.0.s8 %v32_v3  ;;  %p84_p5 = scmp.ne.s32.totalorder %s50_s1, %s83_s17  ;;  %p89_p7 = scmp.lt.s32.totalorder %s83_s17, %s83_s17 }
  0x13   :  { %v36_v7 = vsub.s32 %v33_v5, %v35_v6  ;;  %p90_p8 = por %p89_p7, %p88_p6 }
  0x15   :  { %p91_p9 = pnand %p90_p8, %p84_p5 }
  0x8a   :  { %v30_v8 = vpop.permute.xlu0 %29 }
  0x8b   :  { %v37_v11 = vrot.slane %v30_v8, %v36_v7 }
  0x8d   :  { %v39_v12 = vmul.f32 %v37_v11, %v24_v9  ;;  %v40_v13 = vmul.f32 %v37_v11, %v25_v10 }
  0x8f   :  { %41 = vst [vmem:[#allocation5] sm:$0xff] %v39_v12  ;;  %42 = vst [vmem:[#allocation5 + $0x8] sm:$0xff] %v40_v13 }
  0x90   :  { %94 = shalt.err (!%p91_p9)
}
  0x91   :  { %52 = dma.vmem_to_hbm [thread:$0]  %s50_s1, 256, %s137_s2, [#allocation4]  }
  0x92   :  { %105 = dma.done.wait [#allocation4], 256  }
  0x93   :  { %106 = vsyncadd [#allocation4], 4294967040 }
  0x94   :  { %56 = vsyncpa [#allocation3], 1 }
  0x95   :  { %57 = vsyncpa [#allocation4], 1 }

</bundles_post_ra>
